<compile_context>
chip_gen: v7x
topology: tpu7x:2x2x1
jax: 0.10.0
libtpu: 0.0.40
codegen_flags: <defaults>
</compile_context>

<pallas_src>
import functools

import jax
import jax.numpy as jnp
from jax.experimental import pallas as pl
from jax.experimental.pallas import tpu as pltpu


# ---------------------------------------------------------------------------
# Pallas kernel: fused embedding gather (one-hot matmul), NaN clean,
# split-K fc1 + ReLU, out projection, NaN clean on logits.
# ---------------------------------------------------------------------------
def _agent2_kernel(ids_ref, table_ref, gen_ref, w1e_ref, w1g_ref, b1_ref,
                   w2_ref, b2_ref, logits_ref, emb_ref):
    n_rows = ids_ref.shape[0]
    vocab = table_ref.shape[0]

    # embedding table, NaN -> 0 (equivalent to gathering then cleaning, and
    # prevents NaN propagation through the one-hot matmul).
    table = table_ref[...]
    table = jnp.where(jnp.isnan(table), jnp.zeros_like(table), table)

    # Fused nn.Embedding lookup: one-hot (N, V) @ table (V, H) on the MXU.
    ids = ids_ref[...]                                            # (N, 1) i32
    lane_iota = jax.lax.broadcasted_iota(jnp.int32, (n_rows, vocab), 1)
    one_hot = (ids == lane_iota).astype(jnp.float32)              # (N, V)
    emb = jnp.dot(one_hot, table, preferred_element_type=jnp.float32)  # (N, H)
    emb_ref[...] = emb

    # fc1 on cat(emb, gen) WITHOUT the concat: split-K matmul.
    h = (jnp.dot(emb, w1e_ref[...], preferred_element_type=jnp.float32)
         + jnp.dot(gen_ref[...], w1g_ref[...],
                   preferred_element_type=jnp.float32)
         + b1_ref[...])
    h = jnp.maximum(h, 0.0)                                       # ReLU

    # out projection + NaN -> 0 on the logits.
    logits = jnp.dot(h, w2_ref[...], preferred_element_type=jnp.float32)
    logits = logits + b2_ref[...]
    logits_ref[...] = jnp.where(jnp.isnan(logits), jnp.zeros_like(logits),
                                logits)


# ---------------------------------------------------------------------------
# Wrapper: replicates Agent2.forward(input, emb_generation, for_next)
# ---------------------------------------------------------------------------
@functools.partial(jax.jit, static_argnames=("for_next",))
def agent2_forward(params, input_ids, emb_generation, for_next=False):
    # (1, N) ids -> (N, 1) int32 column (the .squeeze(0) of the reference).
    ids = input_ids.reshape(-1, 1).astype(jnp.int32)
    table = params["embedding"]
    net = params["target_net"] if for_next else params["eval_net"]

    n_rows = ids.shape[0]
    hidden_size = table.shape[1]
    n_actions = net["w2t"].shape[1]

    vmem = pl.BlockSpec(memory_space=pltpu.MemorySpace.VMEM)
    logits, emb_clean = pl.pallas_call(
        _agent2_kernel,
        out_shape=(
            jax.ShapeDtypeStruct((n_rows, n_actions), jnp.float32),
            jax.ShapeDtypeStruct((n_rows, hidden_size), jnp.float32),
        ),
        in_specs=[vmem] * 8,
        out_specs=(vmem, vmem),
    )(ids, table, emb_generation, net["w1e_t"], net["w1g_t"],
      net["b1"], net["w2t"], net["b2"])

    # all_embedding is a pure copy of (kernel output, kernel input); building
    # it here lets XLA fuse the copy and keeps the kernel's store epilogue
    # minimal.
    all_embedding = jnp.concatenate([emb_clean, emb_generation], axis=1)
    return logits, all_embedding


# ---------------------------------------------------------------------------
# Deterministic parameter construction (mirrors the PyTorch __init__ shapes).
# Linear weights are stored pre-transposed; fc1's weight is additionally
# pre-split along K into the embedding-part and generation-part blocks.
# ---------------------------------------------------------------------------
def make_params(key, operations_c, hidden_size, d_model, hidden_dim=128,
                init_w=0.1):
    state_dim = hidden_size + d_model
    keys = jax.random.split(key, 16)

    def make_qnet(kofs):
        # fc1.weight ~ fanin_init: U(-1/sqrt(state_dim), 1/sqrt(state_dim))
        v1 = 1.0 / jnp.sqrt(jnp.float32(state_dim))
        w1 = jax.random.uniform(keys[kofs + 0], (hidden_dim, state_dim),
                                jnp.float32, -v1, v1)
        b1 = jax.random.uniform(keys[kofs + 1], (hidden_dim,),
                                jnp.float32, -v1, v1)
        # out.weight ~ normal(mean=-init_w, std=init_w)
        w2 = (-init_w + init_w *
              jax.random.normal(keys[kofs + 2], (operations_c, hidden_dim),
                                jnp.float32))
        v2 = 1.0 / jnp.sqrt(jnp.float32(hidden_dim))
        b2 = jax.random.uniform(keys[kofs + 3], (operations_c,),
                                jnp.float32, -v2, v2)
        w1t = w1.T                                     # (state_dim, hidden)
        return {
            "w1e_t": w1t[:hidden_size],                # (hidden_size, hidden)
            "w1g_t": w1t[hidden_size:],                # (d_model, hidden)
            "b1": b1.reshape(1, hidden_dim),           # (1, hidden)
            "w2t": w2.T,                               # (hidden, operations_c)
            "b2": b2.reshape(1, operations_c),
        }

    return {
        # nn.Embedding default init: N(0, 1)
        "embedding": jax.random.normal(keys[0], (operations_c, hidden_size),
                                       jnp.float32),
        "eval_net": make_qnet(1),
        "target_net": make_qnet(6),
    }


# ---------------------------------------------------------------------------
# Pure-JAX reference for correctness checking
# ---------------------------------------------------------------------------
def agent2_reference(params, input_ids, emb_generation, for_next=False):
    emb_out = jnp.take(params["embedding"], input_ids, axis=0)[0]
    emb_out = jnp.where(jnp.isnan(emb_out), 0.0, emb_out)
    all_emb = jnp.concatenate([emb_out, emb_generation], axis=1)
    net = params["target_net"] if for_next else params["eval_net"]
    w1t = jnp.concatenate([net["w1e_t"], net["w1g_t"]], axis=0)
    h = jnp.maximum(all_emb @ w1t + net["b1"], 0.0)
    logits = h @ net["w2t"] + net["b2"]
    logits = jnp.where(jnp.isnan(logits), 0.0, logits)
    return logits, all_emb


if __name__ == "__main__":
    # Small, module-consistent shapes.
    operations_c = 16   # vocabulary / number of discrete operations (actions)
    hidden_size = 32    # embedding dim
    d_model = 32        # emb_generation feature dim
    n_tokens = 8        # sequence length (input is shape (1, n_tokens))

    key = jax.random.PRNGKey(0)
    kp, ki, kg = jax.random.split(key, 3)

    params = make_params(kp, operations_c, hidden_size, d_model)

    # Exercise the NaN-masking path: poison one embedding row that IS looked
    # up (row 3) and part of a row that may not be.
    table = params["embedding"]
    table = table.at[3, :].set(jnp.nan).at[7, 5].set(jnp.nan)
    params["embedding"] = table

    input_ids = jax.random.randint(ki, (1, n_tokens), 0, operations_c,
                                   dtype=jnp.int32)
    input_ids = input_ids.at[0, 0].set(3)   # force a NaN-row lookup
    emb_generation = jax.random.normal(kg, (n_tokens, d_model), jnp.float32)

    ok = True
    for for_next in (False, True):
        logits, all_emb = agent2_forward(params, input_ids, emb_generation,
                                         for_next=for_next)
        jax.block_until_ready((logits, all_emb))
        ref_logits, ref_all = agent2_reference(params, input_ids,
                                               emb_generation,
                                               for_next=for_next)
        ok &= bool(jnp.allclose(logits, ref_logits, atol=1e-4, rtol=1e-4))
        ok &= bool(jnp.allclose(all_emb, ref_all, atol=1e-5, rtol=1e-5))
        ok &= bool(jnp.all(jnp.isfinite(logits)))
        ok &= bool(jnp.all(jnp.isfinite(all_emb)))
        assert logits.shape == (n_tokens, operations_c)
        assert all_emb.shape == (n_tokens, hidden_size + d_model)

    if ok:
        print("KERNEL_OK")
    else:
        print("KERNEL_MISMATCH")
</pallas_src>

<mosaic_0001>
module attributes {stable_mosaic.version = 11 : i64} {
  func.func @_agent2_kernel(%arg0: memref<8x1xi32, #tpu.memory_space<vmem>>, %arg1: memref<16x32xf32, #tpu.memory_space<vmem>>, %arg2: memref<8x32xf32, #tpu.memory_space<vmem>>, %arg3: memref<32x128xf32, #tpu.memory_space<vmem>>, %arg4: memref<32x128xf32, #tpu.memory_space<vmem>>, %arg5: memref<1x128xf32, #tpu.memory_space<vmem>>, %arg6: memref<128x16xf32, #tpu.memory_space<vmem>>, %arg7: memref<1x16xf32, #tpu.memory_space<vmem>>, %arg8: memref<8x16xf32, #tpu.memory_space<vmem>>, %arg9: memref<8x32xf32, #tpu.memory_space<vmem>>) attributes {dimension_semantics = [], scalar_prefetch = 0 : i64, scratch_operands = 0 : i64, tpu.core_type = #tpu.core_type<tc>} {
    %c0 = arith.constant 0 : index
    %c0_0 = arith.constant 0 : index
    %0 = vector.load %arg1[%c0, %c0_0] : memref<16x32xf32, #tpu.memory_space<vmem>>, vector<16x32xf32>
    %1 = arith.cmpf one, %0, %0 : vector<16x32xf32>
    %cst = arith.constant 0.000000e+00 : f32
    %2 = vector.broadcast %cst : f32 to vector<16x32xf32>
    %3 = arith.select %1, %2, %0 : vector<16x32xi1>, vector<16x32xf32>
    %c0_1 = arith.constant 0 : index
    %c0_2 = arith.constant 0 : index
    %4 = vector.load %arg0[%c0_1, %c0_2] : memref<8x1xi32, #tpu.memory_space<vmem>>, vector<8x1xi32>
    %5 = tpu.iota {dimensions = array<i32: 1>} : vector<8x16xi32>
    %6 = vector.broadcast %4 : vector<8x1xi32> to vector<8x16xi32>
    %7 = arith.cmpi eq, %6, %5 : vector<8x16xi32>
    %8 = arith.extui %7 : vector<8x16xi1> to vector<8x16xi32>
    %9 = arith.sitofp %8 : vector<8x16xi32> to vector<8x16xf32>
    %cst_3 = arith.constant dense<0.000000e+00> : vector<8x32xf32>
    %10 = tpu.matmul %9, %3, %cst_3 {dimension_numbers = #tpu.dot_dimension_numbers<[1], [0], [0], [1], [0, 0, 1, 1], [], []>} : vector<8x16xf32>, vector<16x32xf32>, vector<8x32xf32> -> vector<8x32xf32>
    %c0_4 = arith.constant 0 : index
    %c0_5 = arith.constant 0 : index
    %11 = vector.load %arg9[%c0_4, %c0_5] : memref<8x32xf32, #tpu.memory_space<vmem>>, vector<8x32xf32>
    tpu.vector_store %arg9[%c0_4, %c0_5], %10 {strides = array<i32>} : memref<8x32xf32, #tpu.memory_space<vmem>>, vector<8x32xf32>,
    %c0_6 = arith.constant 0 : index
    %c0_7 = arith.constant 0 : index
    %12 = vector.load %arg3[%c0_6, %c0_7] : memref<32x128xf32, #tpu.memory_space<vmem>>, vector<32x128xf32>
    %cst_8 = arith.constant dense<0.000000e+00> : vector<8x128xf32>
    %13 = tpu.matmul %10, %12, %cst_8 {dimension_numbers = #tpu.dot_dimension_numbers<[1], [0], [0], [1], [0, 0, 1, 1], [], []>} : vector<8x32xf32>, vector<32x128xf32>, vector<8x128xf32> -> vector<8x128xf32>
    %c0_9 = arith.constant 0 : index
    %c0_10 = arith.constant 0 : index
    %14 = vector.load %arg2[%c0_9, %c0_10] : memref<8x32xf32, #tpu.memory_space<vmem>>, vector<8x32xf32>
    %c0_11 = arith.constant 0 : index
    %c0_12 = arith.constant 0 : index
    %15 = vector.load %arg4[%c0_11, %c0_12] : memref<32x128xf32, #tpu.memory_space<vmem>>, vector<32x128xf32>
    %cst_13 = arith.constant dense<0.000000e+00> : vector<8x128xf32>
    %16 = tpu.matmul %14, %15, %cst_13 {dimension_numbers = #tpu.dot_dimension_numbers<[1], [0], [0], [1], [0, 0, 1, 1], [], []>} : vector<8x32xf32>, vector<32x128xf32>, vector<8x128xf32> -> vector<8x128xf32>
    %17 = arith.addf %13, %16 : vector<8x128xf32>
    %c0_14 = arith.constant 0 : index
    %c0_15 = arith.constant 0 : index
    %18 = vector.load %arg5[%c0_14, %c0_15] : memref<1x128xf32, #tpu.memory_space<vmem>>, vector<1x128xf32>
    %19 = vector.broadcast %18 : vector<1x128xf32> to vector<8x128xf32>
    %20 = arith.addf %17, %19 : vector<8x128xf32>
    %cst_16 = arith.constant 0.000000e+00 : f32
    %21 = vector.broadcast %cst_16 : f32 to vector<8x128xf32>
    %22 = arith.maximumf %20, %21 : vector<8x128xf32>
    %c0_17 = arith.constant 0 : index
    %c0_18 = arith.constant 0 : index
    %23 = vector.load %arg6[%c0_17, %c0_18] : memref<128x16xf32, #tpu.memory_space<vmem>>, vector<128x16xf32>
    %cst_19 = arith.constant dense<0.000000e+00> : vector<8x16xf32>
    %24 = tpu.matmul %22, %23, %cst_19 {dimension_numbers = #tpu.dot_dimension_numbers<[1], [0], [0], [1], [0, 0, 1, 1], [], []>} : vector<8x128xf32>, vector<128x16xf32>, vector<8x16xf32> -> vector<8x16xf32>
    %c0_20 = arith.constant 0 : index
    %c0_21 = arith.constant 0 : index
    %25 = vector.load %arg7[%c0_20, %c0_21] : memref<1x16xf32, #tpu.memory_space<vmem>>, vector<1x16xf32>
    %26 = vector.broadcast %25 : vector<1x16xf32> to vector<8x16xf32>
    %27 = arith.addf %24, %26 : vector<8x16xf32>
    %28 = arith.cmpf one, %27, %27 : vector<8x16xf32>
    %cst_22 = arith.constant 0.000000e+00 : f32
    %29 = vector.broadcast %cst_22 : f32 to vector<8x16xf32>
    %30 = arith.select %28, %29, %27 : vector<8x16xi1>, vector<8x16xf32>
    %c0_23 = arith.constant 0 : index
    %c0_24 = arith.constant 0 : index
    %31 = vector.load %arg8[%c0_23, %c0_24] : memref<8x16xf32, #tpu.memory_space<vmem>>, vector<8x16xf32>
    tpu.vector_store %arg8[%c0_23, %c0_24], %30 {strides = array<i32>} : memref<8x16xf32, #tpu.memory_space<vmem>>, vector<8x16xf32>,
    return
  }
}

</mosaic_0001>

<bundles_post_ra>
// kernel: agent2_forward.1
= control target key start
LH: loop header
LB: loop body
LE: loop exit
PB: predicated region body
PF: predicated region fallthrough
CT: control target
= control target key end

     0   :  { %v575_v3 = vmov 0   ;;  %v576_v4 = vmov 0.0|0.0   ;;  %s757_s0 = inlined_call_operand.vmem [shape: s32[8,1], index: 0, kind: input, shape index: {}]   ;;  %s758_s1 = inlined_call_operand.vmem [shape: f32[16,32], index: 1, kind: input, shape index: {}]   ;;  %s759_s2 = inlined_call_operand.vmem [shape: f32[8,32], index: 2, kind: input, shape index: {}]   ;;  %s760_s3 = inlined_call_operand.vmem [shape: f32[32,128], index: 3, kind: input, shape index: {}]   ;;  %s761_s4 = inlined_call_operand.vmem [shape: f32[32,128], index: 4, kind: input, shape index: {}]   ;;  %s762_s5 = inlined_call_operand.vmem [shape: f32[1,128], index: 5, kind: input, shape index: {}]   ;;  %s763_s6 = inlined_call_operand.vmem [shape: f32[128,16], index: 6, kind: input, shape index: {}]   ;;  %s764_s7 = inlined_call_operand.vmem [shape: f32[1,16], index: 7, kind: input, shape index: {}]   ;;  %s765_s8 = inlined_call_operand.hbm [shape: f32[8,16], index: 8, kind: output, shape index: {0}]   ;;  %s766_s9 = inlined_call_operand.vmem [shape: f32[8,32], index: 9, kind: output, shape index: {1}]  }
   0x1   :  { %v38_v0 = vld [vmem:[%s757_s0] sm:$0xff]  ;;  %v33_v2 = vld [vmem:[%s758_s1 + $0x8] sm:$0xff]  ;;  %550 = vset.pattern.permute.xlu0 %v575_v3  ;;  %505 = vmatprep.subr.bf16.mxu0 %v576_v4 }
   0x2   :  { %v32_v1 = vld [vmem:[%s758_s1] sm:$0xff]  ;;  %vm35_vm1 = vcmp.ne.f32.partialorder %v33_v2, %v33_v2 }
   0x3   :  { %vm34_vm0 = vcmp.ne.f32.partialorder %v32_v1, %v32_v1  ;;  %v506_v5 = vpack.c.bf16 %v33_v2, %v32_v1 }
   0x4   :  { %15 = vsyncpa [#allocation3], 0  ;;  %42 = vperm.xlu0 %550, %v38_v0   ;;  %521 = vmatprep.subr.bf16.mxu1 %v576_v4  ;;  %vm577_vm4 = vmmov 0   ;;  %v578_v6 = vmov 0.0   ;;  %v39_v7 = vlaneseq  ;;  %v128_v9 = vld [vmem:[%s761_s4] sm:$0xff]  ;;  %v129_v10 = vld [vmem:[%s761_s4 + $0x8] sm:$0xff] }
   0x5   :  { %vm402_vm2 = vmneg %vm34_vm0  ;;  %445 = vmatprep.mubr.msk.f32.mxu0 %vm577_vm4, %v578_v6  ;;  %502 = vmatprep.mubr.msk.f32.mxu1 %vm577_vm4, %v578_v6  ;;  %vm47_vm6 = vcmask 130048   ;;  %v510_v12 = vpack.c.bf16 %v129_v10, %v128_v9  ;;  %v130_v13 = vld [vmem:[%s761_s4 + $0x10] sm:$0xff]  ;;  %v131_v14 = vld [vmem:[%s761_s4 + $0x18] sm:$0xff]  ;;  %vm121_vm8 = vcmask 261120   ;;  %s579_s16 = smov [#allocation2]  }
   0x6   :  { %vm404_vm3 = vmneg %vm35_vm1  ;;  %v40_v8 = vand.u32 127, %v39_v7  ;;  %v513_v16 = vpack.c.bf16 %v131_v14, %v130_v13  ;;  %v123_v17 = vld [vmem:[%s760_s3] sm:$0xff]  ;;  %v124_v18 = vld [vmem:[%s760_s3 + $0x8] sm:$0xff]  ;;  %s389_s17 = sshll.u32 %s579_s16, 4  ;;  %s390_s17 = int_to_ptr.vmem [resolvable:$true] %s389_s17 }
   0x7   :  { %vm507_vm5 = vmpackc.low %vm404_vm3, %vm402_vm2  ;;  %v127_v19 = vld [vmem:[%s759_s2] sm:$0xff]  ;;  %v516_v20 = vpack.c.bf16 %v124_v18, %v123_v17  ;;  %v125_v21 = vld [vmem:[%s760_s3 + $0x10] sm:$0xff]  ;;  %p556_p1 = scmp.lt.s32.totalorder %s390_s17, %s390_s17 }
   0x8   :  { %508 = vmatpush3.bf16.msk.msra.mxu0 %vm507_vm5, %v506_v5  ;;  %v126_v22 = vld [vmem:[%s760_s3 + $0x18] sm:$0xff]  ;;  %v287_v24 = vld [vmem:[%s763_s6] sm:$0xff]  ;;  %v288_v25 = vld [vmem:[%s763_s6 + $0x8] sm:$0xff] }
   0x9   :  { %509 = vmatprep.subr.bf16.mxu0 %v576_v4  ;;  %v519_v23 = vpack.c.bf16 %v126_v22, %v125_v21  ;;  %v289_v26 = vld [vmem:[%s763_s6 + $0x10] sm:$0xff]  ;;  %v522_v27 = vpack.c.bf16 %v288_v25, %v287_v24  ;;  %v290_v28 = vld [vmem:[%s763_s6 + $0x18] sm:$0xff]  ;;  %v291_v30 = vld [vmem:[%s763_s6 + $0x20] sm:$0xff] }
   0xa   :  { %v525_v29 = vpack.c.bf16 %v290_v28, %v289_v26  ;;  %v292_v31 = vld [vmem:[%s763_s6 + $0x28] sm:$0xff]  ;;  %v293_v33 = vld [vmem:[%s763_s6 + $0x30] sm:$0xff]  ;;  %v294_v34 = vld [vmem:[%s763_s6 + $0x38] sm:$0xff] }
   0xb   :  { %523 = vmatpush3.bf16.msra.mxu1 %v522_v27  ;;  %v528_v32 = vpack.c.bf16 %v292_v31, %v291_v30  ;;  %v531_v35 = vpack.c.bf16 %v294_v34, %v293_v33  ;;  %v295_v36 = vld [vmem:[%s763_s6 + $0x40] sm:$0xff]  ;;  %v296_v37 = vld [vmem:[%s763_s6 + $0x48] sm:$0xff]  ;;  %v297_v39 = vld [vmem:[%s763_s6 + $0x50] sm:$0xff] }
   0xc   :  { %524 = vmatprep.subr.bf16.mxu1 %v576_v4  ;;  %v534_v38 = vpack.c.bf16 %v296_v37, %v295_v36  ;;  %v298_v40 = vld [vmem:[%s763_s6 + $0x58] sm:$0xff]  ;;  %v299_v46 = vld [vmem:[%s763_s6 + $0x60] sm:$0xff]  ;;  %v300_v47 = vld [vmem:[%s763_s6 + $0x68] sm:$0xff] }
   0xd   :  { %v537_v41 = vpack.c.bf16 %v298_v40, %v297_v39  ;;  %v540_v48 = vpack.c.bf16 %v300_v47, %v299_v46  ;;  %v301_v49 = vld [vmem:[%s763_s6 + $0x70] sm:$0xff]  ;;  %v302_v50 = vld [vmem:[%s763_s6 + $0x78] sm:$0xff]  ;;  %v409_v53 = vld [vmem:[%s762_s5] ss:$0 sm:$0xff]  ;;  %s551_s5 = scalar_lea.vmem %s390_s17, 128 }
   0xe   :  { %v543_v51 = vpack.c.bf16 %v302_v50, %v301_v49  ;;  %v410_v58 = vld [vmem:[%s764_s7] ss:$0 sm:$0xff]  ;;  %p552_p0 = scmp.ne.s32.totalorder %s390_s17, %s551_s5  ;;  %p557_p2 = scmp.lt.s32.totalorder %s551_s5, %s551_s5 }
   0xf   :  { %526 = vmatpush3.bf16.msra.mxu1 %v525_v29 }
  0x10   :  { %527 = vmatprep.subr.bf16.mxu1 %v576_v4  ;;  %p558_p3 = por %p557_p2, %p556_p1 }
  0x12   :  { %p559_p4 = pnand %p558_p3, %p552_p0 }
  0x13   :  { %529 = vmatpush3.bf16.msra.mxu1 %v528_v32 }
  0x14   :  { %530 = vmatprep.subr.bf16.mxu1 %v576_v4 }
  0x17   :  { %532 = vmatpush3.bf16.msra.mxu1 %v531_v35 }
  0x18   :  { %533 = vmatprep.subr.bf16.mxu1 %v576_v4 }
  0x1b   :  { %535 = vmatpush3.bf16.msra.mxu1 %v534_v38 }
  0x1c   :  { %536 = vmatprep.subr.bf16.mxu1 %v576_v4 }
  0x1f   :  { %538 = vmatpush3.bf16.msra.mxu1 %v537_v41 }
  0x20   :  { %539 = vmatprep.subr.bf16.mxu1 %v576_v4 }
  0x23   :  { %541 = vmatpush3.bf16.msra.mxu1 %v540_v48 }
  0x24   :  { %542 = vmatprep.subr.bf16.mxu1 %v576_v4 }
  0x27   :  { %544 = vmatpush3.bf16.msra.mxu1 %v543_v51 }
  0x83   :  { %v43_v11 = vpop.permute.xlu0 %42 }
  0x84   :  { %vm44_vm7 = vcmp.eq.s32.totalorder %v43_v11, %v40_v8 }
  0x85   :  { %v401_v15 = vsel %vm44_vm7, 1.0, %v578_v6 }
  0x86   :  { %446 = vmatmul.mubr.msk.f32.vlgmr.msra.gmra.mrb[0].mxu0 %vm47_vm6, %v401_v15 }
  0x87   :  { %511 = vmatpush3.bf16.msra.mxu0 %v510_v12  ;;  %456 = vmatprep.mubr.msk.f32.mxu0 %vm577_vm4, %v578_v6 }
  0x88   :  { %512 = vmatprep.subr.bf16.mxu0 %v576_v4 }
  0x8b   :  { %514 = vmatpush3.bf16.msra.mxu0 %v513_v16 }
  0x8c   :  { %515 = vmatprep.subr.bf16.mxu0 %v576_v4 }
  0x8e   :  { %457 = vmatmul.mubr.msk.f32.vlgmr.msra.gmra.mrb[2].mxu0 %vm121_vm8, %v127_v19 }
  0x8f   :  { %517 = vmatpush3.bf16.msra.mxu0 %v516_v20  ;;  %467 = vmatprep.mubr.msk.f32.mxu0 %vm577_vm4, %v578_v6 }
  0x90   :  { %518 = vmatprep.subr.bf16.mxu0 %v576_v4 }
  0x93   :  { %520 = vmatpush3.bf16.msra.mxu0 %v519_v23 }
 0x159   :  { %v117_v42 = vpop.f32.mrb[0].mxu0 }
 0x15a   :  { %122 = vst.msk [vmem:[%s766_s9] sm:$0xff] %vm121_vm8, %v117_v42  ;;  %v447_v43 = vpop.f32.mrb[1].mxu0  ;;  %468 = vmatmul.mubr.msk.f32.vlgmr.msra.gmra.mrb[4].mxu0 %vm121_vm8, %v117_v42 }
 0x161   :  { %v201_v44 = vpop.f32.mrb[2].mxu0 }
 0x162   :  { %v458_v45 = vpop.f32.mrb[3].mxu0 }
 0x22d   :  { %v274_v52 = vpop.f32.mrb[4].mxu0 }
 0x22e   :  { %v275_v54 = vadd.f32 %v274_v52, %v201_v44  ;;  %v469_v55 = vpop.f32.mrb[5].mxu0 }
 0x230   :  { %v285_v56 = vadd.f32 %v409_v53, %v275_v54 }
 0x232   :  { %v286_v57 = vmax.f32 %v285_v56, 0.0 }
 0x234   :  { %503 = vmatmul.mubr.f32.vlgmr.msra.gmra.mrb[0].mxu1 %v286_v57 }
 0x307   :  { %v376_v59 = vpop.f32.mrb[0].mxu1 }
 0x308   :  { %v377_v60 = vadd.f32 %v410_v58, %v376_v59  ;;  %v504_v61 = vpop.f32.mrb[1].mxu1 }
 0x30a   :  { %vm380_vm9 = vcmp.ne.f32.partialorder %v377_v60, %v377_v60 }
 0x30b   :  { %v381_v62 = vsel %vm380_vm9, 0.0, %v377_v60 }
 0x30c   :  { %382 = vst.msk [vmem:[#allocation2] sm:$0xff] %vm47_vm6, %v381_v62 }
 0x30d   :  { %562 = shalt.err (!%p559_p4)
}
 0x30e   :  { %s563_s7 = scalar_lea.hbm %s765_s8, 128 }
 0x30f   :  { %p564_p5 = scmp.ne.s32.totalorder %s765_s8, %s563_s7  ;;  %p567_p6 = scmp.lt.u32.totalorder %s563_s7, %s765_s8 }
 0x311   :  { %p569_p7 = pnand %p567_p6, %p564_p5 }
 0x313   :  { %572 = shalt.err (!%p569_p7)
}
 0x314   :  { %392 = dma.vmem_to_hbm [thread:$0]  %s390_s17, 128, %s765_s8, [#allocation3]  }
 0x315   :  { %573 = dma.done.wait [#allocation3], 128  }
 0x316   :  { %574 = vsyncadd [#allocation3], 4294967168 }
 0x317   :  { %400 = vsyncpa [#allocation3], 1 }

</bundles_post_ra>
